<compile_context>
chip_gen: v5e
topology: v5e:2x2
jax: 0.10.0
libtpu: 0.0.40
codegen_flags: <defaults>
</compile_context>

<pallas_src>
import functools

import numpy as np
import jax
import jax.numpy as jnp
from jax import lax
from jax.experimental import pallas as pl
from jax.experimental.pallas import tpu as pltpu


# ----------------------------- reference helpers -----------------------------

def dct_mat(size):
    return [[(np.sqrt(1.0 / size) if i == 0 else np.sqrt(2.0 / size))
             * np.cos((j + 0.5) * np.pi * i / size) for j in range(size)]
            for i in range(size)]


def generate_filter(start, end, size):
    return [[0.0 if i + j > end or i + j <= start else 1.0 for j in range(size)]
            for i in range(size)]


def norm_sigma(x):
    return 2.0 * jax.nn.sigmoid(x) - 1.0


def _choose_l_tiling(L, max_tile=2048):
    """Return (l_tile, padded_L).  Prefer a 128-multiple tile that divides L;
    otherwise pad L up to a multiple of a 128-multiple tile so the grid keeps
    pipelining and no single block blows the scoped-VMEM budget (v7x: 64 MiB
    physical VMEM)."""
    if L <= max_tile:
        return L, L
    t0 = max_tile - (max_tile % 128)
    t = t0
    while t >= 128:
        if L % t == 0:
            return t, L
        t -= 128
    lp = ((L + t0 - 1) // t0) * t0
    return t0, lp


def _pick_channel_tile(C, max_tile=256):
    """Largest output-channel tile dividing C (multiple of 8), else full C."""
    if C <= max_tile:
        return C
    for t in range(max_tile, 7, -1):
        if C % t == 0 and t % 8 == 0:
            return t
    return C


# --------------------------------- FAD head ----------------------------------

def _fad_kernel(S, x_ref, d_ref, dt_ref, filt_ref, o_ref):
    # x: (1, 1, S, S) bf16   d/dt: (S, S) bf16   filt: (4, S, S) f32
    # o: (1, 4, 1, S, S) f32
    d = d_ref[...]
    dt = dt_ref[...]
    x = x_ref[0, 0]
    # stage 1: x_freq = D @ x @ D^T   (bf16 operands, f32 accumulate)
    xr = jnp.dot(x, dt, preferred_element_type=jnp.float32)            # (S, S)
    xf = jnp.dot(d, xr.astype(d.dtype),
                 preferred_element_type=jnp.float32)                   # (S, S)
    # stage 2: gate with all 4 filters in ONE broadcast VPU multiply, then
    # batched right-multiply and batched left-multiply (no per-(f) loops).
    xp = xf[None, :, :] * filt_ref[...]                                # (4, S, S)
    xpr = jnp.dot(xp.reshape(4 * S, S).astype(d.dtype), d,
                  preferred_element_type=jnp.float32)                  # (4S, S)
    dt_b = jnp.broadcast_to(dt, (4, S, S))
    y = jnp.einsum('fij,fjk->fik', dt_b, xpr.reshape(4, S, S).astype(d.dtype),
                   preferred_element_type=jnp.float32)                 # (4, S, S)
    o_ref[...] = y.reshape(1, 4, 1, S, S)


@jax.jit
def fad_head(x, dct, dct_t, filters):
    N, C, S, _ = x.shape
    x_bf = x.astype(jnp.bfloat16)
    d_bf = dct.astype(jnp.bfloat16)
    dt_bf = dct_t.astype(jnp.bfloat16)
    flops = int(20 * N * C * S ** 3)
    bytes_acc = int(2 * N * C * S * S + 4 * (4 * N * C * S * S + 5 * S * S))
    out = pl.pallas_call(
        functools.partial(_fad_kernel, S),
        out_shape=jax.ShapeDtypeStruct((N, 4, C, S, S), jnp.float32),
        grid_spec=pltpu.PrefetchScalarGridSpec(
            num_scalar_prefetch=0,
            grid=(N, C),                      # 2-D parallel grid (v7x megacore)
            in_specs=[
                pl.BlockSpec((1, 1, S, S), lambda n, c: (n, c, 0, 0)),
                pl.BlockSpec((S, S), lambda n, c: (0, 0)),
                pl.BlockSpec((S, S), lambda n, c: (0, 0)),
                pl.BlockSpec((4, S, S), lambda n, c: (0, 0, 0)),
            ],
            out_specs=pl.BlockSpec((1, 4, 1, S, S),
                                   lambda n, c: (n, 0, c, 0, 0)),
        ),
        compiler_params=pltpu.CompilerParams(
            dimension_semantics=("parallel", "parallel"),
            vmem_limit_bytes=32 * 1024 * 1024),
        cost_estimate=pl.CostEstimate(flops=flops, transcendentals=0,
                                      bytes_accessed=bytes_acc),
    )(x_bf, d_bf, dt_bf, filters)
    # torch.cat(y_list, dim=1): filter-major, colour-minor channel order.
    return out.reshape(N, 4 * C, S, S)


# --------------------------------- LFS head ----------------------------------

def _lfs_kernel(p_ref, k_ref, f_ref, o_ref):
    # p: (1, Lt, S^2)   k: (S^2, S^2) = kron(D^T, D^T)
    # f: (M, S^2) pre-transposed and pre-scaled by 1/ln(10)
    # o: (1, M, Lt)  (lane-dense, produced directly by the MXU -- no transpose)
    # NOTE: DCT kept in f32 (not bf16): log(|spec| + 1e-15) is sensitive to
    #       low-magnitude bins (review correctness concern).
    spec = jnp.dot(p_ref[0], k_ref[...], preferred_element_type=jnp.float32)
    y = jnp.log(jnp.abs(spec) + 1e-15)                  # 1/ln10 folded into f
    o_ref[0] = lax.dot_general(f_ref[...], y, (((1,), (1,)), ((), ())),
                               preferred_element_type=jnp.float32)   # (M, Lt)


@functools.partial(jax.jit, static_argnums=(3, 4))
def lfs_head(x, dct_kron, filters_mt, window_size, M):
    N = x.shape[0]
    S = window_size
    S2 = S * S
    gray = 0.299 * x[:, 0] + 0.587 * x[:, 1] + 0.114 * x[:, 2]
    img = (gray + 1.0) * 122.5
    H = img.shape[1]
    sa = (H - S + 8) // 2 + 1
    L = sa * sa
    xp = jnp.pad(img, ((0, 0), (4, 4), (4, 4)))
    # nn.Unfold(kernel=(S,S), stride=2, padding=4) as S*S strided slices; the
    # patches land already flattened with S^2 on the lane dim (row-major (a,d)
    # within a patch, row-major (i,j) over patch positions == unfold order).
    # TODO(synk): on v5e/v6e the ~16 MB patches HBM round-trip could be cut by
    #             moving extraction into the kernel (strided manual DMA).
    stop = 2 * (sa - 1) + 1
    cols = [xp[:, a:a + stop:2, d:d + stop:2].reshape(N, L)
            for a in range(S) for d in range(S)]
    patches = jnp.stack(cols, axis=-1)                              # (N, L, S^2)

    lt, Lp = _choose_l_tiling(L)
    if Lp > L:
        patches = jnp.pad(patches, ((0, 0), (0, Lp - L), (0, 0)))

    flops = int(N * Lp * (2 * S2 * S2 + 2 * S2 * M))
    bytes_acc = int(4 * (N * Lp * S2 + S2 * S2 + S2 * M + N * M * Lp))
    out = pl.pallas_call(
        _lfs_kernel,
        out_shape=jax.ShapeDtypeStruct((N, M, Lp), jnp.float32),
        grid_spec=pltpu.PrefetchScalarGridSpec(
            num_scalar_prefetch=0,
            grid=(N, Lp // lt),
            in_specs=[
                pl.BlockSpec((1, lt, S2), lambda n, l: (n, l, 0)),
                pl.BlockSpec((S2, S2), lambda n, l: (0, 0)),
                pl.BlockSpec((M, S2), lambda n, l: (0, 0)),
            ],
            out_specs=pl.BlockSpec((1, M, lt), lambda n, l: (n, 0, l)),
        ),
        compiler_params=pltpu.CompilerParams(
            dimension_semantics=("parallel", "parallel"),
            vmem_limit_bytes=32 * 1024 * 1024),
        cost_estimate=pl.CostEstimate(flops=flops,
                                      transcendentals=int(N * Lp * S2),
                                      bytes_accessed=bytes_acc),
    )(patches, dct_kron, filters_mt)
    return out[:, :, :L].reshape(N, M, sa, sa)


# --------------------------------- MixBlock ----------------------------------

def _mix_kernel(ct, W, xf_ref, xl_ref, wf_ref, wl_ref, aff_ref, yf_ref, yl_ref):
    # xf/xl: (1, C+1, W^2) f32 (last row = ones for bias folding)
    # wf/wl: (1, 2*ct, C+1) bf16   aff: (ct, 4) f32   yf/yl: (1, ct, W^2) f32
    ci = pl.program_id(1)
    W2 = W * W
    xf_bf = xf_ref[0].astype(jnp.bfloat16)
    xl_bf = xl_ref[0].astype(jnp.bfloat16)
    # fused query/key projections for this output-channel tile (bf16 MXU)
    pf = jnp.dot(wf_ref[0], xf_bf, preferred_element_type=jnp.float32)   # (2ct, W2)
    pl_ = jnp.dot(wl_ref[0], xl_bf, preferred_element_type=jnp.float32)  # (2ct, W2)
    # Coalesced energy: exactly torch's bmm(M_query, M_key) with the FAD/LFS
    # halves concatenated along the contraction axis -> ONE batched einsum.
    q = jnp.concatenate([pf[:ct].reshape(ct, W, W),
                         pl_[:ct].reshape(ct, W, W)], axis=2)            # (ct, W, 2W)
    k = jnp.concatenate([pf[ct:].reshape(ct, W, W),
                         pl_[ct:].reshape(ct, W, W)], axis=2)            # (ct, W, 2W)
    energy = jnp.einsum('cih,cjh->cij', q, k,
                        preferred_element_type=jnp.float32)              # (ct, W, W)
    e_max = jnp.max(energy, axis=-1, keepdims=True)
    e_exp = jnp.exp(energy - e_max)
    denom = jnp.sum(e_exp, axis=-1, keepdims=True)
    attention = (e_exp / denom).reshape(ct, W2)        # exact softmax divide

    c0 = pl.multiple_of(ci * ct, ct)
    xf_t = xf_ref[0, pl.ds(c0, ct), :]
    xl_t = xl_ref[0, pl.ds(c0, ct), :]
    aff = aff_ref[...]
    yf_ref[0] = xf_t + aff[:, 0:1] * (xl_t * attention) + aff[:, 1:2]
    yl_ref[0] = xl_t + aff[:, 2:3] * (xf_t * attention) + aff[:, 3:4]


def _pack_qk(wq, bq, wk, bk, ct):
    # rows [0:ct] of tile ci = query rows, rows [ct:2ct] = key rows; bias folded
    # as an extra input column (matched by the ones row of the activations).
    C = wq.shape[0]
    nt = C // ct
    q_aug = jnp.concatenate([wq, bq[:, None]], axis=1).reshape(nt, ct, C + 1)
    k_aug = jnp.concatenate([wk, bk[:, None]], axis=1).reshape(nt, ct, C + 1)
    return jnp.concatenate([q_aug, k_aug], axis=1)          # (nt, 2*ct, C+1)


@jax.jit
def mix_block(x_fad, x_lfs, p):
    B, C, W, _ = x_fad.shape
    W2 = W * W
    ct = _pick_channel_tile(C)
    nt = C // ct
    eps = 1e-5
    # Fold depthwise 1x1 conv + eval-mode BatchNorm + the (2*sigmoid(gamma)-1)
    # gate into a per-channel affine.  Exactly as in the module: the LFS gate
    # multiplies the term added to y_FAD (and vice versa), and the conv bias is
    # NOT gated (bn(conv(0)) == bn(bias)).
    inv_fad = p['fad_bn_gamma'] / jnp.sqrt(p['fad_bn_var'] + eps)
    inv_lfs = p['lfs_bn_gamma'] / jnp.sqrt(p['lfs_bn_var'] + eps)
    g_fad = 2.0 * jax.nn.sigmoid(p['fad_gamma']) - 1.0
    g_lfs = 2.0 * jax.nn.sigmoid(p['lfs_gamma']) - 1.0
    fad_scale = inv_fad * p['fad_cw'] * g_lfs
    fad_shift = inv_fad * (p['fad_cb'] - p['fad_bn_mean']) + p['fad_bn_beta']
    lfs_scale = inv_lfs * p['lfs_cw'] * g_fad
    lfs_shift = inv_lfs * (p['lfs_cb'] - p['lfs_bn_mean']) + p['lfs_bn_beta']
    aff = jnp.stack([fad_scale, fad_shift, lfs_scale, lfs_shift], axis=1)  # (C, 4)

    w_fad = _pack_qk(p['wq_fad'], p['bq_fad'],
                     p['wk_fad'], p['bk_fad'], ct).astype(jnp.bfloat16)
    w_lfs = _pack_qk(p['wq_lfs'], p['bq_lfs'],
                     p['wk_lfs'], p['bk_lfs'], ct).astype(jnp.bfloat16)

    ones = jnp.ones((B, 1, W2), x_fad.dtype)
    xf_aug = jnp.concatenate([x_fad.reshape(B, C, W2), ones], axis=1)  # (B, C+1, W2)
    xl_aug = jnp.concatenate([x_lfs.reshape(B, C, W2), ones], axis=1)

    flops = int(B * (2 * 2 * (2 * C) * (C + 1) * W2 + 4 * C * W ** 3))
    bytes_acc = int(4 * (2 * B * (C + 1) * W2 + 4 * C + 2 * B * C * W2)
                    + 2 * 4 * nt * ct * (C + 1))
    # NOTE: grid order (B, nt) with ci innermost is intentional: xf/xl blocks
    # are constant in ci (VMEM-resident across channel tiles) and only the
    # small per-tile weight blocks are re-DMA'd each step.  Do not reorder.
    yf, yl = pl.pallas_call(
        functools.partial(_mix_kernel, ct, W),
        out_shape=(jax.ShapeDtypeStruct((B, C, W2), jnp.float32),
                   jax.ShapeDtypeStruct((B, C, W2), jnp.float32)),
        grid_spec=pltpu.PrefetchScalarGridSpec(
            num_scalar_prefetch=0,
            grid=(B, nt),
            in_specs=[
                pl.BlockSpec((1, C + 1, W2), lambda b, ci: (b, 0, 0)),
                pl.BlockSpec((1, C + 1, W2), lambda b, ci: (b, 0, 0)),
                pl.BlockSpec((1, 2 * ct, C + 1), lambda b, ci: (ci, 0, 0)),
                pl.BlockSpec((1, 2 * ct, C + 1), lambda b, ci: (ci, 0, 0)),
                pl.BlockSpec((ct, 4), lambda b, ci: (ci, 0)),
            ],
            out_specs=[
                pl.BlockSpec((1, ct, W2), lambda b, ci: (b, ci, 0)),
                pl.BlockSpec((1, ct, W2), lambda b, ci: (b, ci, 0)),
            ],
        ),
        compiler_params=pltpu.CompilerParams(
            dimension_semantics=("parallel", "parallel"),
            vmem_limit_bytes=32 * 1024 * 1024),
        cost_estimate=pl.CostEstimate(flops=flops,
                                      transcendentals=int(B * C * W2),
                                      bytes_accessed=bytes_acc),
    )(xf_aug, xl_aug, w_fad, w_lfs, aff)
    return yf.reshape(B, C, W, W), yl.reshape(B, C, W, W)


# ----------------------------- parameter builders -----------------------------

def make_fad_params(size, key):
    d = np.array(dct_mat(size), dtype=np.float32)
    dct = jnp.asarray(d)
    dct_t = jnp.asarray(d.T)
    bands = [(0, size // 2.82), (size // 2.82, size // 2),
             (size // 2, size * 2), (0, size * 2)]
    keys = jax.random.split(key, 4)
    filts = []
    for (s, e), k in zip(bands, keys):
        base = jnp.asarray(np.array(generate_filter(s, e, size), dtype=np.float32))
        learn = 0.1 * jax.random.normal(k, (size, size), dtype=jnp.float32)
        filts.append(base + norm_sigma(learn))
    return dct, dct_t, jnp.stack(filts)      # (4, S, S)


def make_lfs_params(window_size, M, key):
    d = np.array(dct_mat(window_size), dtype=np.float32)
    # 2-D DCT of a row-major-flattened patch as one right-multiplication:
    # spec[u*S+v] = sum_{a,b} D[u,a] D[v,b] p[a*S+b]  =>  K = kron(D^T, D^T)
    kron = jnp.asarray(np.kron(d.T, d.T).astype(np.float32))
    keys = jax.random.split(key, M)
    filts = []
    for i in range(M):
        start = window_size * 2.0 / M * i
        end = window_size * 2.0 / M * (i + 1)
        base = np.array(generate_filter(start, end, window_size), dtype=np.float32)
        ft_num = float(base.sum())
        learn = 0.1 * jax.random.normal(keys[i], (window_size, window_size),
                                        dtype=jnp.float32)
        filts.append((jnp.asarray(base) + norm_sigma(learn)) / ft_num)
    f = jnp.stack(filts)                                         # (M, S, S)
    # (M, S^2), pre-scaled by 1/ln(10) so the kernel can use natural log
    # (exact fold of log10); also already in the (M, S^2) orientation so the
    # kernel's dot_general produces the lane-dense (M, Lt) block directly.
    f_mt = f.reshape(M, window_size * window_size) / np.float32(np.log(10.0))
    return kron, f_mt                                            # (S^2,S^2),(M,S^2)


def make_mix_params(C, key):
    ks = jax.random.split(key, 12)
    nrm = lambda k, shape: 0.1 * jax.random.normal(k, shape, dtype=jnp.float32)
    return {
        'wq_fad': nrm(ks[0], (C, C)), 'bq_fad': nrm(ks[1], (C,)),
        'wk_fad': nrm(ks[2], (C, C)), 'bk_fad': nrm(ks[3], (C,)),
        'wq_lfs': nrm(ks[4], (C, C)), 'bq_lfs': nrm(ks[5], (C,)),
        'wk_lfs': nrm(ks[6], (C, C)), 'bk_lfs': nrm(ks[7], (C,)),
        'fad_cw': nrm(ks[8], (C,)), 'fad_cb': nrm(ks[9], (C,)),
        'lfs_cw': nrm(ks[10], (C,)), 'lfs_cb': nrm(ks[11], (C,)),
        'fad_gamma': jnp.zeros(()), 'lfs_gamma': jnp.zeros(()),
        # eval-mode BatchNorm parameters / running stats (PyTorch defaults)
        'fad_bn_gamma': jnp.ones((C,)), 'fad_bn_beta': jnp.zeros((C,)),
        'fad_bn_mean': jnp.zeros((C,)), 'fad_bn_var': jnp.ones((C,)),
        'lfs_bn_gamma': jnp.ones((C,)), 'lfs_bn_beta': jnp.zeros((C,)),
        'lfs_bn_mean': jnp.zeros((C,)), 'lfs_bn_var': jnp.ones((C,)),
    }


# ----------------------------------- main ------------------------------------

if __name__ == "__main__":
    key = jax.random.PRNGKey(0)
    IMG = 16   # small stand-in for img_width = img_height = 288
    WIN = 8    # small stand-in for LFS_window_size = 10
    M = 4      # small stand-in for LFS_M = 6
    N = 2

    kx, kf, kl, km, kfeat = jax.random.split(key, 5)
    x = jax.random.normal(kx, (N, 3, IMG, IMG), dtype=jnp.float32)

    # FAD head: (N, 3, IMG, IMG) -> (N, 12, IMG, IMG)
    dct, dct_t, fad_filters = make_fad_params(IMG, kf)
    fad_out = fad_head(x, dct, dct_t, fad_filters)

    # LFS head: (N, 3, IMG, IMG) -> (N, M, size_after, size_after)
    lfs_kron, lfs_filters = make_lfs_params(WIN, M, kl)
    lfs_out = lfs_head(x, lfs_kron, lfs_filters, WIN, M)

    # MixBlock demo (stands in for mix_block7/mix_block12 inside _features,
    # whose Xception inputs cannot be produced - see TODO above).
    C_MIX, W_MIX = 8, 8
    mix_params = make_mix_params(C_MIX, km)
    kf1, kf2 = jax.random.split(kfeat)
    feat_fad = jax.random.normal(kf1, (N, C_MIX, W_MIX, W_MIX), jnp.float32)
    feat_lfs = jax.random.normal(kf2, (N, C_MIX, W_MIX, W_MIX), jnp.float32)
    y_fad, y_lfs = mix_block(feat_fad, feat_lfs, mix_params)

    jax.block_until_ready((fad_out, lfs_out, y_fad, y_lfs))
    assert fad_out.shape == (N, 12, IMG, IMG)
    assert lfs_out.shape == (N, M, 9, 9)
    assert y_fad.shape == (N, C_MIX, W_MIX, W_MIX)
    assert y_lfs.shape == (N, C_MIX, W_MIX, W_MIX)
    print("KERNEL_OK")
</pallas_src>

<mosaic_0001>
module attributes {stable_mosaic.version = 11 : i64} {
  func.func @_fad_kernel(%arg0: i32, %arg1: i32, %arg2: memref<1x1x16x16xbf16, #tpu.memory_space<vmem>>, %arg3: memref<16x16xbf16, #tpu.memory_space<vmem>>, %arg4: memref<16x16xbf16, #tpu.memory_space<vmem>>, %arg5: memref<4x16x16xf32, #tpu.memory_space<vmem>>, %arg6: memref<1x4x1x16x16xf32, #tpu.memory_space<vmem>>) attributes {dimension_semantics = [#tpu.dimension_semantics<parallel>, #tpu.dimension_semantics<parallel>], iteration_bounds = array<i64: 2, 3>, scalar_prefetch = 0 : i64, scratch_operands = 0 : i64, tpu.core_type = #tpu.core_type<tc>, window_params = [{transform_indices = @transform_0, window_bounds = array<i64: 1, 1, 16, 16>}, {pipeline_mode = #tpu.pipeline_mode<synchronous>, transform_indices = @transform_1, window_bounds = array<i64: 16, 16>}, {pipeline_mode = #tpu.pipeline_mode<synchronous>, transform_indices = @transform_2, window_bounds = array<i64: 16, 16>}, {pipeline_mode = #tpu.pipeline_mode<synchronous>, transform_indices = @transform_3, window_bounds = array<i64: 4, 16, 16>}, {transform_indices = @transform_4, window_bounds = array<i64: 1, 4, 1, 16, 16>}]} {
    %c0 = arith.constant 0 : index
    %c0_0 = arith.constant 0 : index
    %0 = vector.load %arg3[%c0, %c0_0] : memref<16x16xbf16, #tpu.memory_space<vmem>>, vector<16x16xbf16>
    %c0_1 = arith.constant 0 : index
    %c0_2 = arith.constant 0 : index
    %1 = vector.load %arg4[%c0_1, %c0_2] : memref<16x16xbf16, #tpu.memory_space<vmem>>, vector<16x16xbf16>
    %c0_3 = arith.constant 0 : index
    %c0_4 = arith.constant 0 : index
    %c0_5 = arith.constant 0 : index
    %c0_6 = arith.constant 0 : index
    %2 = vector.load %arg2[%c0_3, %c0_4, %c0_5, %c0_6] : memref<1x1x16x16xbf16, #tpu.memory_space<vmem>>, vector<1x1x16x16xbf16>
    %3 = vector.shape_cast %2 : vector<1x1x16x16xbf16> to vector<16x16xbf16>
    %cst = arith.constant dense<0.000000e+00> : vector<16x16xf32>
    %4 = tpu.matmul %3, %1, %cst {dimension_numbers = #tpu.dot_dimension_numbers<[1], [0], [0], [1], [0, 0, 1, 1], [], []>} : vector<16x16xbf16>, vector<16x16xbf16>, vector<16x16xf32> -> vector<16x16xf32>
    %5 = arith.truncf %4 : vector<16x16xf32> to vector<16x16xbf16>
    %cst_7 = arith.constant dense<0.000000e+00> : vector<16x16xf32>
    %6 = tpu.matmul %0, %5, %cst_7 {dimension_numbers = #tpu.dot_dimension_numbers<[1], [0], [0], [1], [0, 0, 1, 1], [], []>} : vector<16x16xbf16>, vector<16x16xbf16>, vector<16x16xf32> -> vector<16x16xf32>
    %7 = vector.shape_cast %6 : vector<16x16xf32> to vector<1x16x16xf32>
    %c0_8 = arith.constant 0 : index
    %c0_9 = arith.constant 0 : index
    %c0_10 = arith.constant 0 : index
    %8 = vector.load %arg5[%c0_8, %c0_9, %c0_10] : memref<4x16x16xf32, #tpu.memory_space<vmem>>, vector<4x16x16xf32>
    %9 = vector.broadcast %7 : vector<1x16x16xf32> to vector<4x16x16xf32>
    %10 = arith.mulf %9, %8 : vector<4x16x16xf32>
    %11 = vector.shape_cast %10 : vector<4x16x16xf32> to vector<64x16xf32>
    %12 = arith.truncf %11 : vector<64x16xf32> to vector<64x16xbf16>
    %cst_11 = arith.constant dense<0.000000e+00> : vector<64x16xf32>
    %13 = tpu.matmul %12, %0, %cst_11 {dimension_numbers = #tpu.dot_dimension_numbers<[1], [0], [0], [1], [0, 0, 1, 1], [], []>} : vector<64x16xbf16>, vector<16x16xbf16>, vector<64x16xf32> -> vector<64x16xf32>
    %14 = vector.shape_cast %1 : vector<16x16xbf16> to vector<1x16x16xbf16>
    %15 = vector.broadcast %14 : vector<1x16x16xbf16> to vector<4x16x16xbf16>
    %16 = vector.shape_cast %13 : vector<64x16xf32> to vector<4x16x16xf32>
    %17 = arith.truncf %16 : vector<4x16x16xf32> to vector<4x16x16xbf16>
    "tpu.trace_start"() <{level = 10 : i32, message = "fij,fjk->fik"}> : () -> ()
    %cst_12 = arith.constant dense<0.000000e+00> : vector<4x16x16xf32>
    %18 = tpu.matmul %15, %17, %cst_12 {dimension_numbers = #tpu.dot_dimension_numbers<[2], [1], [1], [2], [0, 0, 0, 1, 1, 2], [0], [0]>} : vector<4x16x16xbf16>, vector<4x16x16xbf16>, vector<4x16x16xf32> -> vector<4x16x16xf32>
    "tpu.trace_stop"() : () -> ()
    %19 = vector.shape_cast %18 : vector<4x16x16xf32> to vector<1x4x1x16x16xf32>
    %c0_13 = arith.constant 0 : index
    %c0_14 = arith.constant 0 : index
    %c0_15 = arith.constant 0 : index
    %c0_16 = arith.constant 0 : index
    %c0_17 = arith.constant 0 : index
    %20 = vector.load %arg6[%c0_13, %c0_14, %c0_15, %c0_16, %c0_17] : memref<1x4x1x16x16xf32, #tpu.memory_space<vmem>>, vector<1x4x1x16x16xf32>
    tpu.vector_store %arg6[%c0_13, %c0_14, %c0_15, %c0_16, %c0_17], %19 {strides = array<i32>} : memref<1x4x1x16x16xf32, #tpu.memory_space<vmem>>, vector<1x4x1x16x16xf32>,
    return
  }
  func.func @transform_0(%arg0: i32, %arg1: i32) -> (i32, i32, i32, i32) {
    %c0_i32 = arith.constant 0 : i32
    %c0_i32_0 = arith.constant 0 : i32
    %c0_i32_1 = arith.constant 0 : i32
    return %arg0, %arg1, %c0_i32, %c0_i32_0 : i32, i32, i32, i32
  }
  func.func @transform_1(%arg0: i32, %arg1: i32) -> (i32, i32) {
    %c0_i32 = arith.constant 0 : i32
    %c0_i32_0 = arith.constant 0 : i32
    %c0_i32_1 = arith.constant 0 : i32
    return %c0_i32, %c0_i32_0 : i32, i32
  }
  func.func @transform_2(%arg0: i32, %arg1: i32) -> (i32, i32) {
    %c0_i32 = arith.constant 0 : i32
    %c0_i32_0 = arith.constant 0 : i32
    %c0_i32_1 = arith.constant 0 : i32
    return %c0_i32, %c0_i32_0 : i32, i32
  }
  func.func @transform_3(%arg0: i32, %arg1: i32) -> (i32, i32, i32) {
    %c0_i32 = arith.constant 0 : i32
    %c0_i32_0 = arith.constant 0 : i32
    %c0_i32_1 = arith.constant 0 : i32
    %c0_i32_2 = arith.constant 0 : i32
    return %c0_i32, %c0_i32_0, %c0_i32_1 : i32, i32, i32
  }
  func.func @transform_4(%arg0: i32, %arg1: i32) -> (i32, i32, i32, i32, i32) {
    %c0_i32 = arith.constant 0 : i32
    %c0_i32_0 = arith.constant 0 : i32
    %c0_i32_1 = arith.constant 0 : i32
    %c0_i32_2 = arith.constant 0 : i32
    return %arg0, %c0_i32, %arg1, %c0_i32_0, %c0_i32_1 : i32, i32, i32, i32, i32
  }
}

</mosaic_0001>

<bundles_post_ra>
// kernel: fad_head.1
= control target key start
LH: loop header
LB: loop body
LE: loop exit
PB: predicated region body
PF: predicated region fallthrough
CT: control target
= control target key end

     0   :  { %9 = vsyncpa [#allocation3], 0  ;;  %s980_s0 = inlined_call_operand.vmem [shape: bf16[2,3,16,16], index: 0, kind: input, shape index: {}]   ;;  %s981_s1 = inlined_call_operand.vmem [shape: bf16[16,16], index: 1, kind: input, shape index: {}]   ;;  %s982_s2 = inlined_call_operand.vmem [shape: bf16[16,16], index: 2, kind: input, shape index: {}]   ;;  %s983_s3 = inlined_call_operand.vmem [shape: f32[4,16,16], index: 3, kind: input, shape index: {}]   ;;  %s984_s4 = inlined_call_operand.hbm [shape: f32[2,4,3,16,16], index: 4, kind: output, shape index: {}]  }
   0x1   :  { %11 = vsyncpa [#allocation3 + $0x1], 0  ;;  %s795_s15 = smov 0   ;;  %s797_s16 = smov 0  }
   0x2   :  { %s799_s17 = smov 0   ;;  %s801_s18 = smov 0  }
   0x3   :  { %s803_s19 = smov 0   ;;  %s805_s20 = smov 0  }
   0x4   :  { %s807_s21 = smov 0   ;;  %s809_s22 = smov 0  }
   0x5 LB: > { %s570_s23 = sadd.s32 4294967295, %s761_s22   ;;  %s571_s24 = sadd.s32 4294967294, %s761_s22   ;;  %s761_s22 = sphi %s809_s22, %s17_s22   ;;  %s757_s21 = sphi %s807_s21, %s993_s21   ;;  %s753_s20 = sphi %s805_s20, %s992_s20   ;;  %s749_s19 = sphi %s803_s19, %s991_s19   ;;  %s745_s18 = sphi %s801_s18, %s990_s18   ;;  %s741_s17 = sphi %s799_s17, %s989_s17   ;;  %s737_s16 = sphi %s797_s16, %s988_s16   ;;  %s733_s15 = sphi %s795_s15, %s987_s15  }
   0x6   : > { %s26_s25 = sadd.s32 1, %s753_s20  ;;  %s29_s26 = sadd.s32 1, %s757_s21 }
   0x7   : > { %p27_p0 = scmp.ge.s32.totalorder %s26_s25, 3  ;;  %p139_p1 = scmp.ne.s32.totalorder %s741_s17, %s737_s16 }
   0x8   : > { %p140_p2 = scmp.eq.s32.totalorder %s570_s23, 5  ;;  %p145_p5 = scmp.ne.s32.totalorder %s737_s16, %s733_s15 }
   0x9   : > { %s995_s25 = smov (%p27_p0, %s26_s25), 0  ;;  %s997_s26 = smov (!%p27_p0, %s29_s26), %s757_s21 }
   0xa   : > { %s125_s27 = ssub.s32 %s753_s20, %s995_s25  ;;  %p846_p3 = por %p140_p2, %p139_p1 }
   0xb   : > { %p31_p4 = scmp.ge.s32.totalorder %s997_s26, 2  ;;  %p146_p6 = scmp.eq.s32.totalorder %s571_s24, 5 }
   0xc   : > { %p574_p7 = scmp.ge.s32.totalorder %s761_s22, 1  ;;  %p185_p9 = scmp.lt.s32.totalorder %s761_s22, 7 }
   0xd   : > { %s999_s26 = smov (%p31_p4, %s997_s26), 0  ;;  %p855_p8 = por %p146_p6, %p145_p5 }
   0xe   : > { %s124_s30 = ssub.s32 %s757_s21, %s999_s26  ;;  %s129_s5 = sadd.s32 1, %s741_s17 }
   0xf   : > { %s126_s6 = sor.u32 %s125_s27, %s124_s30  ;;  %p186_p10 = pnand %p574_p7, %p185_p9 }
  0x10   : > { %p127_p11 = scmp.eq.s32.totalorder %s126_s6, 0  ;;  %p215_p12 = scmp.lt.s32.totalorder (!%p186_p10), %s749_s19, 1 }
  0x11   : > { %189 = sbr.rel (%p186_p10) target bundleno = 640 (0x280), region = 36  ;;  %p217_p13 = scmp.lt.s32.totalorder (!%p186_p10), %s745_s18, 2 }
  0x12   : > { %s864_s7 = scalar_select %p127_p11, %s741_s17, %s129_s5  }
  0x16   : > { %v869_v0 = vld [vmem:[%s982_s2] sm:$0xff]  ;;  %s216_s10 = scalar_select %p215_p12, %s749_s19, 1  ;;  %vm242_vm0 = vcmask 130048   ;;  %v285_v8 = vld [vmem:[%s983_s3 + $0x10] sm:$0xff]  ;;  %v284_v9 = vld [vmem:[%s983_s3 + $0x8] sm:$0xff] }
  0x17   : > { %253 = vmatpush.bf16.msra.mxu0 %v869_v0  ;;  %s218_s11 = scalar_select %p217_p13, %s745_s18, 2  ;;  %v605_v2 = vld [vmem:[%s981_s1] sm:$0xff]  ;;  %v286_v10 = vld [vmem:[%s983_s3 + $0x18] sm:$0xff]  ;;  %v288_v18 = vld [vmem:[%s983_s3 + $0x28] sm:$0xff] }
  0x18   : > { %s609_s12 = smul.u32 6, %s216_s10  ;;  %608 = vmatpush.bf16.msra.mxu2 %v605_v2  ;;  %v283_v7 = vld [vmem:[%s983_s3] sm:$0xff]  ;;  %v290_v23 = vld [vmem:[%s983_s3 + $0x38] sm:$0xff]  ;;  %v289_v24 = vld [vmem:[%s983_s3 + $0x30] sm:$0xff] }
  0x19   : > { %s576_s13 = sshll.u32 %s218_s11, 1  ;;  %v287_v19 = vld [vmem:[%s983_s3 + $0x20] sm:$0xff]  ;;  %s212_s11 = sand.u32 1, %s737_s16  }
  0x1a   : > { %s221_s14 = sadd.s32 %s609_s12, %s576_s13  ;;  %s575_s12 = sshll.u32 %s212_s11, 6 }
  0x1b   : > { %s577_s23 = sshll.u32 %s221_s14, 2  ;;  %323 = vmatpush.bf16.msrb.mxu0 %v605_v2  ;;  %s214_s13 = scalar_lea.vmem [#allocation2], %s575_s12 }
  0x1c   : > { %s223_s30 = scalar_lea.vmem %s980_s0, %s577_s23  ;;  %s445_s14 = scalar_lea.sflag [#allocation3], %s212_s11 }
  0x1d   : > { %v607_v1 = vld [vmem:[%s223_s30] sm:$0xff] }
  0x1e   : > { %586 = vmatmul.msk.bf16.vlgmr.msra.gmra.mxu0 %vm242_vm0, %v607_v1 }
  0x9b   : > { %v255_v3 = vpop.f32.mrf.mxu0 }
  0xa3   : > { %v257_v4 = vpop.f32.mrf.mxu0 }
  0xa4   : > { %v260_v5 = vpack.c.bf16 %v257_v4, %v255_v3 }
  0xa6   : > { %276 = vmatpush.bf16.msra.mxu1 %v260_v5 }
  0xa9   : > { %591 = vmatmul.msk.bf16.vlgmr.msra.gmra.mxu1 %vm242_vm0, %v605_v2 }
 0x126   : > { %v278_v6 = vpop.f32.mrf.mxu1 }
 0x127   : > { %v291_v12 = vmul.f32 %v283_v7, %v278_v6  ;;  %v293_v13 = vmul.f32 %v285_v8, %v278_v6  ;;  %v295_v21 = vmul.f32 %v287_v19, %v278_v6  ;;  %v297_v26 = vmul.f32 %v289_v24, %v278_v6 }
 0x12e   : > { %v280_v11 = vpop.f32.mrf.mxu1 }
 0x12f   : > { %v292_v14 = vmul.f32 %v284_v9, %v280_v11  ;;  %v294_v15 = vmul.f32 %v286_v10, %v280_v11  ;;  %v296_v20 = vmul.f32 %v288_v18, %v280_v11  ;;  %v298_v25 = vmul.f32 %v290_v23, %v280_v11 }
 0x131   : > { %v299_v16 = vpack.c.bf16 %v292_v14, %v291_v12  ;;  %v300_v17 = vpack.c.bf16 %v294_v15, %v293_v13  ;;  %v301_v22 = vpack.c.bf16 %v296_v20, %v295_v21  ;;  %v302_v27 = vpack.c.bf16 %v298_v25, %v297_v26 }
 0x133   : > { %592 = vmatmul.msk.bf16.vlgmr.msrb.gmra.mxu0 %vm242_vm0, %v299_v16  ;;  %593 = vmatmul.msk.bf16.vlgmr.msra.gmra.mxu2 %vm242_vm0, %v300_v17 }
 0x143   : > { %594 = vmatmul.msk.bf16.gmra.mxu2 %vm242_vm0, %v301_v22 }
 0x153   : > { %595 = vmatmul.msk.bf16.gmra.mxu2 %vm242_vm0, %v302_v27 }
 0x1b0   : > { %v325_v28 = vpop.f32.mrf.mxu0 }
 0x1b1   : > { %v345_v30 = vpack.c.bf16 %v325_v28, %v325_v28 }
 0x1b3   : > { %v355_v33 = vunpack.c.l.b16 %v345_v30 }
 0x1b6   : > { %v330_v29 = vpop.f32.mrf.mxu2 }
 0x1b7   : > { %v347_v35 = vpack.c.bf16 %v330_v29, %v330_v29 }
 0x1b8   : > { %v327_v31 = vpop.f32.mrf.mxu0 }
 0x1b9   : > { %v346_v32 = vpack.c.bf16 %v327_v31, %v327_v31  ;;  %v378_v39 = vunpack.c.l.b16 %v347_v35 }
 0x1bb   : > { %v356_v34 = vunpack.c.l.b16 %v346_v32 }
 0x1bd   : > { %v357_v36 = vpack.c.b16 %v356_v34, %v355_v33 }
 0x1be   : > { %v332_v37 = vpop.f32.mrf.mxu2 }
 0x1bf   : > { %v348_v38 = vpack.c.bf16 %v332_v37, %v332_v37  ;;  %369 = vmatpush.bf16.msra.mxu3 %v357_v36 }
 0x1c1   : > { %v379_v40 = vunpack.c.l.b16 %v348_v38 }
 0x1c2   : > { %596 = vmatmul.msk.bf16.vlgmr.msra.gmra.mxu3 %vm242_vm0, %v869_v0 }
 0x1c3   : > { %v380_v41 = vpack.c.b16 %v379_v40, %v378_v39 }
 0x1c5   : > { %389 = vmatpush.bf16.msra.mxu0 %v380_v41 }
 0x1c6   : > { %v335_v42 = vpop.f32.mrf.mxu2 }
 0x1c7   : > { %v349_v43 = vpack.c.bf16 %v335_v42, %v335_v42 }
 0x1c8   : > { %597 = vmatmul.msk.bf16.vlgmr.msra.gmra.mxu0 %vm242_vm0, %v869_v0 }
 0x1c9   : > { %v398_v46 = vunpack.c.l.b16 %v349_v43 }
 0x1ce   : > { %v337_v44 = vpop.f32.mrf.mxu2 }
 0x1cf   : > { %v350_v45 = vpack.c.bf16 %v337_v44, %v337_v44 }
 0x1d1   : > { %v399_v47 = vunpack.c.l.b16 %v350_v45 }
 0x1d3   : > { %v400_v48 = vpack.c.b16 %v399_v47, %v398_v46 }
 0x1d5   : > { %409 = vmatpush.bf16.msrb.mxu1 %v400_v48 }
 0x1d6   : > { %v340_v49 = vpop.f32.mrf.mxu2 }
 0x1d7   : > { %v351_v50 = vpack.c.bf16 %v340_v49, %v340_v49 }
 0x1d8   : > { %598 = vmatmul.msk.bf16.vlgmr.msrb.gmra.mxu1 %vm242_vm0, %v869_v0 }
 0x1d9   : > { %v418_v53 = vunpack.c.l.b16 %v351_v50 }
 0x1de   : > { %v342_v51 = vpop.f32.mrf.mxu2 }
 0x1df   : > { %v352_v52 = vpack.c.bf16 %v342_v51, %v342_v51 }
 0x1e1   : > { %v419_v54 = vunpack.c.l.b16 %v352_v52 }
 0x1e3   : > { %v420_v55 = vpack.c.b16 %v419_v54, %v418_v53 }
 0x1e5   : > { %429 = vmatpush.bf16.msrb.mxu3 %v420_v55 }
 0x1e8   : > { %599 = vmatmul.msk.bf16.vlgmr.msrb.gmra.mxu3 %vm242_vm0, %v869_v0 }
 0x245   : > { %v371_v56 = vpop.f32.mrf.mxu3  ;;  %v391_v57 = vpop.f32.mrf.mxu0 }
 0x246   : > { %436 = vst.msk [vmem:[%s214_s13] sm:$0xff] %vm242_vm0, %v371_v56 }
 0x247   : > { %438 = vst.msk [vmem:[%s214_s13 + $0x10] sm:$0xff] %vm242_vm0, %v391_v57 }
 0x24d   : > { %v373_v58 = vpop.f32.mrf.mxu3  ;;  %v393_v59 = vpop.f32.mrf.mxu0 }
 0x24e   : > { %437 = vst.msk [vmem:[%s214_s13 + $0x8] sm:$0xff] %vm242_vm0, %v373_v58 }
 0x24f   : > { %439 = vst.msk [vmem:[%s214_s13 + $0x18] sm:$0xff] %vm242_vm0, %v393_v59 }
 0x255   : > { %v411_v60 = vpop.f32.mrf.mxu1 }
 0x256   : > { %440 = vst.msk [vmem:[%s214_s13 + $0x20] sm:$0xff] %vm242_vm0, %v411_v60 }
 0x25d   : > { %v413_v61 = vpop.f32.mrf.mxu1 }
 0x25e   : > { %441 = vst.msk [vmem:[%s214_s13 + $0x28] sm:$0xff] %vm242_vm0, %v413_v61 }
 0x26b   : > { %v431_v62 = vpop.f32.mrf.mxu3 }
 0x26c   : > { %442 = vst.msk [vmem:[%s214_s13 + $0x30] sm:$0xff] %vm242_vm0, %v431_v62 }
 0x273   : > { %v433_v63 = vpop.f32.mrf.mxu3 }
 0x274   : > { %443 = vst.msk [vmem:[%s214_s13 + $0x38] sm:$0xff] %vm242_vm0, %v433_v63 }
 0x275   : > { %s601_s23 = sshll.u32 %s745_s18, 1  ;;  %s610_s24 = smul.u32 24, %s749_s19 }
 0x276   : > { %s469_s27 = sshll.u32 %s214_s13, 4  ;;  %s763_s6 = smov 256   ;;  %s470_s27 = int_to_ptr.vmem [resolvable:$true] %s469_s27 }
 0x277   : > { %s456_s30 = sadd.s32 %s610_s24, %s601_s23  ;;  %611 = sst [smem:[#allocation5]] (%p846_p3), %s763_s6 }
 0x278   : > { %s602_s5 = sshll.u32 %s456_s30, 3  ;;  %s764_s12 = smov 768  }
 0x279   : > { %s458_s10 = scalar_lea.hbm %s984_s4, %s602_s5  ;;  %612 = sst [smem:[#allocation5 + $0x1]] (%p846_p3), %s764_s12 }
 0x27a   : > { %s471_s11 = sshll.u32 %s458_s10, 4  ;;  %s765_s18 = smov 2   ;;  %s472_s11 = int_to_ptr.hbm [resolvable:$true] %s471_s11 }
 0x27b   : > { %613 = sst [smem:[#allocation5 + $0x2]] (%p846_p3), %s765_s18  ;;  %s766_s19 = smov 128  }
 0x27c   : > { %614 = sst [smem:[#allocation5 + $0x3]] (%p846_p3), %s766_s19  ;;  %s767_s13 = smov 8  }
 0x27d   : > { %615 = sst [smem:[#allocation5 + $0x4]] (%p846_p3), %s766_s19  ;;  %s768_s23 = smov [#allocation4]  }
 0x27e   : > { %616 = sst [smem:[#allocation5 + $0x5]] (%p846_p3), %s767_s13  ;;  %s769_s24 = smov 0  }
 0x27f   : > { %617 = dma.general (%p846_p3), %s470_s27, 1024, %s472_s11, %s445_s14, %s768_s23, [#allocation5], %s769_s24, 0  }
 0x280 PF: > { %p623_p0 = scmp.ge.s32.totalorder %s761_s22, 2  ;;  %s499_s30 = sand.u32 1, %s733_s15  }
 0x281   : > { %s500_s5 = scalar_lea.sflag [#allocation3], %s499_s30 }
 0x282   : > { %p620_p1 = pnand %p623_p0, %p855_p8 }
 0x284   : > { %p621_p2 = pneg %p620_p1 }
 0x286   : > { %728 = dma.done.wait (%p621_p2), %s500_s5, 1024  }
 0x287   : > { %730 = vsyncadd (%p621_p2), %s500_s5, 4294966272  ;;  %s17_s22 = sadd.s32 1, %s761_s22   ;;  %s987_s15 = smov %s737_s16 }
 0x288   : > { %p14_p4 = scmp.ge.s32.totalorder %s17_s22, 8   ;;  %s988_s16 = smov %s741_s17 }
 0x289   : > { %s989_s17 = smov %s864_s7  ;;  %s990_s18 = smov %s753_s20 }
 0x28a   : > { %s991_s19 = smov %s757_s21  ;;  %s992_s20 = smov %s995_s25 }
 0x28b   : > { %s993_s21 = smov %s999_s26  ;;  %16 = sbr.rel (!%p14_p4) target bundleno = 5 (0x5), region = 76 }
 0x290   :  { %506 = vsyncpa [#allocation3], 1 }
 0x291   :  { %508 = vsyncpa [#allocation3 + $0x1], 1 }

</bundles_post_ra>
